<compile_context>
chip_gen: v5e
topology: v5e:2x2
jax: 0.10.0
libtpu: 0.0.40
codegen_flags: <defaults>
</compile_context>

<pallas_src>
import functools
import math

import jax
import jax.numpy as jnp
from jax import lax
from jax.experimental import pallas as pl
from jax.experimental.pallas import tpu as pltpu

S_DEF, B_DEF, C_DEF = 7, 2, 20
LAMBDA_COORD, LAMBDA_NOOBJ, LAMBDA_CLASS, LAMBDA_COOB = 5.0, 0.5, 1.0, 1.0
IOU_EPS = 1e-10

LANE = 128
SUB = 8
QUANTUM = SUB * LANE              # 1024 cells = one dense (8,128) plane
MAX_TILE_CELLS = 16 * QUANTUM     # 16384 cells / tile  (~1.9 MiB per input block)


def _yolo_loss_kernel(pred_ref, targ_ref, out_ref, *, n_chunks, n_class,
                      cell_size, l_coord, l_noobj, l_class, l_coob):
    """One tile.  pred/targ blocks are [30, n_chunks*8, 128] (channel-major)."""

    def chunk(s, acc):
        r0 = pl.multiple_of(s * SUB, SUB)
        rows = pl.ds(r0, SUB)

        def P(c):                         # (8, 128) dense plane, pred channel c
            return pred_ref[c, rows, :].astype(jnp.float32)

        def T(c):                         # (8, 128) dense plane, target channel c
            return targ_ref[c, rows, :].astype(jnp.float32)

        # ---- class term (channels 10:) -- small static loop keeps live set tiny
        class_t = jnp.zeros((SUB, LANE), jnp.float32)
        for c in range(10, 10 + n_class):
            d = P(c) - T(c)
            class_t = class_t + d * d

        # ---- no-object confidence term (conf channels 4 and 9; B == 2) ----
        p0c, p1c = P(4), P(9)
        conf0 = T(4)                      # box-0 target conf decides the cell type
        d4 = p0c - conf0
        d9 = p1c - T(9)
        noobj_t = d4 * d4 + d9 * d9
        coord_m = conf0 > 0.0
        noobj_m = conf0 == 0.0            # exact equality, matches the reference

        # ---- responsible-box selection via IoU (B == 2) ----
        p0w, p0h, p1w, p1h = P(2), P(3), P(7), P(8)
        tw, th = T(2), T(3)

        # Reference broadcasting quirk (valid only for B == 2): the x corners of
        # BOTH pred boxes use box-0's w as the centre term, the y corners use
        # box-1's w.
        cx = p0w * cell_size
        cy = p1w * cell_size
        w2_0, h2_0 = p0w * p0w, p0h * p0h
        w2_1, h2_1 = p1w * p1w, p1h * p1h
        hw0, hh0 = 0.5 * w2_0, 0.5 * h2_0     # hoisted half-extents
        hw1, hh1 = 0.5 * w2_1, 0.5 * h2_1

        tcx = tw * cell_size
        tx1, ty1 = tcx - 0.5 * tw, tcx - 0.5 * th
        tx2, ty2 = tcx + 0.5 * tw, tcx + 0.5 * th
        t_area = tw * th                       # direct area, no corner diffs

        def inter_union(hw, hh, area):
            w = jnp.maximum(jnp.minimum(cx + hw, tx2) - jnp.maximum(cx - hw, tx1), 0.0)
            h = jnp.maximum(jnp.minimum(cy + hh, ty2) - jnp.maximum(cy - hh, ty1), 0.0)
            inter = w * h
            return inter, area + t_area - inter + IOU_EPS   # eps guards degenerates

        i0, u0 = inter_union(hw0, hh0, w2_0 * h2_0)
        i1, u1 = inter_union(hw1, hh1, w2_1 * h2_1)
        # iou1 > iou0  <=>  i1*u0 > i0*u1 (unions > 0): no divide in the compare.
        resp1 = (i1 * u0) > (i0 * u1)
        u_sel = jnp.where(resp1, u1, u0)
        r = pl.reciprocal(u_sel, approx=True)
        r = r * (2.0 - u_sel * r)              # one Newton step -> ~f32 accuracy
        max_iou = jnp.where(resp1, i1, i0) * r

        # ---- coordinate / objectness terms for the responsible box ----
        sel = lambda a, b: jnp.where(resp1, a, b)
        dx = sel(P(5), P(0)) - sel(T(5), T(0))
        dy = sel(P(6), P(1)) - sel(T(6), T(1))
        dw = sel(p1w, p0w) - jnp.sqrt(sel(T(7), tw))
        dh = sel(p1h, p0h) - jnp.sqrt(sel(T(8), th))
        dc = sel(p1c, p0c) - max_iou

        coord_t = (l_coord * (dx * dx + dy * dy + dw * dw + dh * dh)
                   + l_coob * (dc * dc) + l_class * class_t)

        # NOTE: where-select (not multiply-by-mask) so garbage from the other
        # branch / zero-padded cells is discarded, never propagated.
        per_cell = (jnp.where(coord_m, coord_t, 0.0)
                    + jnp.where(noobj_m, l_noobj * noobj_t, 0.0))
        return acc + per_cell

    acc = lax.fori_loop(0, n_chunks, chunk, jnp.zeros((SUB, LANE), jnp.float32))
    out_ref[...] = acc                     # dense (8,128) partial, unmasked store


def _round_up(x, m):
    return (x + m - 1) // m * m


def detection_loss(pred_tensor, target_tensor=None, *, S=S_DEF, B=B_DEF, C=C_DEF,
                   lambda_coord=LAMBDA_COORD, lambda_noobj=LAMBDA_NOOBJ,
                   lambda_class=LAMBDA_CLASS, lambda_coob=LAMBDA_COOB,
                   max_tile_cells=MAX_TILE_CELLS):
    """Mirrors Detection.forward: returns (pred_tensor, loss)."""
    if target_tensor is None:
        return pred_tensor, 0
    assert B == 2, "reference broadcasting semantics require B == 2"
    n = 5 * B + C
    assert pred_tensor.shape[-1] == n and target_tensor.shape == pred_tensor.shape
    batch_size = pred_tensor.shape[0]

    # ---- tile sizing: dense (8,128) cell quanta, >= 2 tiles when possible ----
    n_cells = math.prod(pred_tensor.shape[:-1])          # batch * S * S
    r_pad_q = _round_up(n_cells, QUANTUM)
    min_tiles = 2 if r_pad_q >= 2 * QUANTUM else 1       # keep both v7x TCs busy
    tile_cells = min(max_tile_cells,
                     _round_up(-(-r_pad_q // min_tiles), QUANTUM))
    num_tiles = -(-r_pad_q // tile_cells)
    r_pad = num_tiles * tile_cells
    sub_rows = tile_cells // LANE
    n_chunks = sub_rows // SUB

    # ---- channel-major dense layout: [30, r_pad/128, 128] ----
    # Zero-padded cells have target conf == 0 and zero conf diffs, so they
    # contribute exactly 0 to every term -> no in-kernel tail mask needed.
    # TODO(synk): for very large batches, produce this channel-major layout
    # upstream to remove the pad+transpose HBM round trip done here.
    pred_flat = pred_tensor.reshape(-1, n)
    targ_flat = target_tensor.reshape(-1, n)
    pad = r_pad - n_cells
    if pad:
        pred_flat = jnp.pad(pred_flat, ((0, pad), (0, 0)))
        targ_flat = jnp.pad(targ_flat, ((0, pad), (0, 0)))
    pred_t = pred_flat.T.reshape(n, r_pad // LANE, LANE)
    targ_t = targ_flat.T.reshape(n, r_pad // LANE, LANE)

    kernel = functools.partial(
        _yolo_loss_kernel,
        n_chunks=n_chunks, n_class=C, cell_size=1.0 / float(S),
        l_coord=float(lambda_coord), l_noobj=float(lambda_noobj),
        l_class=float(lambda_class), l_coob=float(lambda_coob))

    itemsize = jnp.dtype(pred_t.dtype).itemsize
    cost = pl.CostEstimate(flops=160 * r_pad, transcendentals=3 * r_pad,
                           bytes_accessed=2 * r_pad * n * itemsize
                           + num_tiles * QUANTUM * 4)

    # VMEM footprint: 2 inputs x 2 buffers x (30*sub_rows*128*4B) <= ~7.5 MiB,
    # well under the default scoped-VMEM limit on v5e/v6e/v7x.  pl.Buffered(3)
    # on the input specs is only worth it if profiling shows exposed DMA waits.
    partials = pl.pallas_call(
        kernel,
        out_shape=jax.ShapeDtypeStruct((num_tiles * SUB, LANE), jnp.float32),
        grid=(num_tiles,),
        in_specs=[pl.BlockSpec((n, sub_rows, LANE), lambda i: (0, i, 0)),
                  pl.BlockSpec((n, sub_rows, LANE), lambda i: (0, i, 0))],
        out_specs=pl.BlockSpec((SUB, LANE), lambda i: (i, 0)),
        compiler_params=pltpu.CompilerParams(
            dimension_semantics=("parallel",)),
        cost_estimate=cost,
    )(pred_t, targ_t)

    loss = jnp.sum(partials) / jnp.float32(batch_size)
    return pred_tensor, loss


def reference_loss(pred_tensor, target_tensor, *, S=S_DEF, B=B_DEF, C=C_DEF,
                   lambda_coord=LAMBDA_COORD, lambda_noobj=LAMBDA_NOOBJ,
                   lambda_class=LAMBDA_CLASS, lambda_coob=LAMBDA_COOB):
    """Plain-JAX dense reference (exact division) for validation."""
    n = 5 * B + C
    batch_size = pred_tensor.shape[0]
    pred = pred_tensor.reshape(-1, n).astype(jnp.float32)
    targ = target_tensor.reshape(-1, n).astype(jnp.float32)
    cs = 1.0 / float(S)

    conf0 = targ[:, 4:5]
    coord_m = conf0 > 0.0
    noobj_m = conf0 == 0.0
    zero = jnp.zeros_like(conf0)

    d4 = pred[:, 4:5] - targ[:, 4:5]
    d9 = pred[:, 9:10] - targ[:, 9:10]
    loss_noobj = jnp.sum(jnp.where(noobj_m, d4 * d4 + d9 * d9, zero))

    cd = pred[:, 10:] - targ[:, 10:]
    loss_class = jnp.sum(jnp.where(coord_m, jnp.sum(cd * cd, axis=1, keepdims=True), zero))

    p0w, p0h = pred[:, 2:3], pred[:, 3:4]
    p1w, p1h = pred[:, 7:8], pred[:, 8:9]
    tw, th = targ[:, 2:3], targ[:, 3:4]
    cx0, cx1 = p0w * cs, p1w * cs
    b0 = (cx0 - 0.5 * p0w * p0w, cx1 - 0.5 * p0h * p0h,
          cx0 + 0.5 * p0w * p0w, cx1 + 0.5 * p0h * p0h)
    b1 = (cx0 - 0.5 * p1w * p1w, cx1 - 0.5 * p1h * p1h,
          cx0 + 0.5 * p1w * p1w, cx1 + 0.5 * p1h * p1h)
    tcx = tw * cs
    tb = (tcx - 0.5 * tw, tcx - 0.5 * th, tcx + 0.5 * tw, tcx + 0.5 * th)
    t_area = (tb[2] - tb[0]) * (tb[3] - tb[1])

    def iu(b):
        x1, y1, x2, y2 = b
        w = jnp.maximum(jnp.minimum(x2, tb[2]) - jnp.maximum(x1, tb[0]), 0.0)
        h = jnp.maximum(jnp.minimum(y2, tb[3]) - jnp.maximum(y1, tb[1]), 0.0)
        inter = w * h
        return inter, (x2 - x1) * (y2 - y1) + t_area - inter + IOU_EPS

    i0, u0 = iu(b0)
    i1, u1 = iu(b1)
    resp1 = (i1 * u0) > (i0 * u1)
    max_iou = jnp.where(resp1, i1 / u1, i0 / u0)

    rp = jnp.where(resp1, pred[:, 5:10], pred[:, 0:5])
    rt = jnp.where(resp1, targ[:, 5:10], targ[:, 0:5])
    dxy = rp[:, 0:2] - rt[:, 0:2]
    dwh = rp[:, 2:4] - jnp.sqrt(rt[:, 2:4])
    dob = rp[:, 4:5] - max_iou
    xy_t = jnp.sum(dxy * dxy, axis=1, keepdims=True)
    wh_t = jnp.sum(dwh * dwh, axis=1, keepdims=True)
    ob_t = dob * dob

    loss_coord = jnp.sum(jnp.where(coord_m, xy_t + wh_t, zero))
    loss_obj = jnp.sum(jnp.where(coord_m, ob_t, zero))

    total = (lambda_coord * loss_coord + lambda_coob * loss_obj
             + lambda_noobj * loss_noobj + lambda_class * loss_class)
    return total / float(batch_size)


if __name__ == "__main__":
    key = jax.random.PRNGKey(0)
    k1, k2, k3 = jax.random.split(key, 3)

    batch, S, B, C = 2, S_DEF, B_DEF, C_DEF
    N = 5 * B + C

    pred = jax.random.uniform(k1, (batch, S, S, N), jnp.float32)
    target = jax.random.uniform(k2, (batch, S, S, N), jnp.float32)
    # ~half the cells are object cells (conf > 0) and the rest empty (conf == 0);
    # target w/h stay in [0, 1) so sqrt() is well defined.
    obj_cells = jax.random.bernoulli(k3, 0.5, (batch, S, S))
    conf = jnp.where(obj_cells, 0.5 + 0.5 * target[..., 4], 0.0)
    target = target.at[..., 4].set(conf)

    pred_out, loss = detection_loss(pred, target)
    loss = jax.block_until_ready(loss)

    ref = reference_loss(pred, target)
    assert jnp.isfinite(loss), loss
    # tolerance covers the Newton-refined approximate reciprocal in the IoU and
    # the different f32 accumulation order vs the dense reference
    assert jnp.allclose(loss, ref, rtol=5e-4, atol=1e-3), (loss, ref)

    # TODO(synk): torch.max tie-breaking for exactly-equal IoUs is unspecified;
    # this implementation picks box 0 on ties (ties have measure zero here).
    print("KERNEL_OK")
</pallas_src>

<mosaic_0001>
module attributes {stable_mosaic.version = 11 : i64} {
  func.func @_yolo_loss_kernel(%arg0: i32, %arg1: memref<30x8x128xf32, #tpu.memory_space<vmem>>, %arg2: memref<30x8x128xf32, #tpu.memory_space<vmem>>, %arg3: memref<8x128xf32, #tpu.memory_space<vmem>>) attributes {dimension_semantics = [#tpu.dimension_semantics<parallel>], iteration_bounds = array<i64: 1>, scalar_prefetch = 0 : i64, scratch_operands = 0 : i64, tpu.core_type = #tpu.core_type<tc>, window_params = [{transform_indices = @transform_0, window_bounds = array<i64: 30, 8, 128>}, {transform_indices = @transform_1, window_bounds = array<i64: 30, 8, 128>}, {transform_indices = @transform_2, window_bounds = array<i64: 8, 128>}]} {
    %cst = arith.constant 0.000000e+00 : f32
    %0 = vector.broadcast %cst : f32 to vector<8x128xf32>
    %c0_i32 = arith.constant 0 : i32
    %c8_i32 = arith.constant 8 : i32
    %1 = arith.muli %c0_i32, %c8_i32 : i32
    %2 = tpu.assume_multiple %1, 8 : i32
    %cst_0 = arith.constant 0.000000e+00 : f32
    %3 = vector.broadcast %cst_0 : f32 to vector<8x128xf32>
    %c10 = arith.constant 10 : index
    %4 = arith.index_cast %2 : i32 to index
    %c0 = arith.constant 0 : index
    %5 = vector.load %arg1[%c10, %4, %c0] : memref<30x8x128xf32, #tpu.memory_space<vmem>>, vector<1x8x128xf32>
    %6 = vector.shape_cast %5 : vector<1x8x128xf32> to vector<8x128xf32>
    %c10_1 = arith.constant 10 : index
    %7 = arith.index_cast %2 : i32 to index
    %c0_2 = arith.constant 0 : index
    %8 = vector.load %arg2[%c10_1, %7, %c0_2] : memref<30x8x128xf32, #tpu.memory_space<vmem>>, vector<1x8x128xf32>
    %9 = vector.shape_cast %8 : vector<1x8x128xf32> to vector<8x128xf32>
    %10 = arith.subf %6, %9 : vector<8x128xf32>
    %11 = arith.mulf %10, %10 : vector<8x128xf32>
    %12 = arith.addf %3, %11 : vector<8x128xf32>
    %c11 = arith.constant 11 : index
    %13 = arith.index_cast %2 : i32 to index
    %c0_3 = arith.constant 0 : index
    %14 = vector.load %arg1[%c11, %13, %c0_3] : memref<30x8x128xf32, #tpu.memory_space<vmem>>, vector<1x8x128xf32>
    %15 = vector.shape_cast %14 : vector<1x8x128xf32> to vector<8x128xf32>
    %c11_4 = arith.constant 11 : index
    %16 = arith.index_cast %2 : i32 to index
    %c0_5 = arith.constant 0 : index
    %17 = vector.load %arg2[%c11_4, %16, %c0_5] : memref<30x8x128xf32, #tpu.memory_space<vmem>>, vector<1x8x128xf32>
    %18 = vector.shape_cast %17 : vector<1x8x128xf32> to vector<8x128xf32>
    %19 = arith.subf %15, %18 : vector<8x128xf32>
    %20 = arith.mulf %19, %19 : vector<8x128xf32>
    %21 = arith.addf %12, %20 : vector<8x128xf32>
    %c12 = arith.constant 12 : index
    %22 = arith.index_cast %2 : i32 to index
    %c0_6 = arith.constant 0 : index
    %23 = vector.load %arg1[%c12, %22, %c0_6] : memref<30x8x128xf32, #tpu.memory_space<vmem>>, vector<1x8x128xf32>
    %24 = vector.shape_cast %23 : vector<1x8x128xf32> to vector<8x128xf32>
    %c12_7 = arith.constant 12 : index
    %25 = arith.index_cast %2 : i32 to index
    %c0_8 = arith.constant 0 : index
    %26 = vector.load %arg2[%c12_7, %25, %c0_8] : memref<30x8x128xf32, #tpu.memory_space<vmem>>, vector<1x8x128xf32>
    %27 = vector.shape_cast %26 : vector<1x8x128xf32> to vector<8x128xf32>
    %28 = arith.subf %24, %27 : vector<8x128xf32>
    %29 = arith.mulf %28, %28 : vector<8x128xf32>
    %30 = arith.addf %21, %29 : vector<8x128xf32>
    %c13 = arith.constant 13 : index
    %31 = arith.index_cast %2 : i32 to index
    %c0_9 = arith.constant 0 : index
    %32 = vector.load %arg1[%c13, %31, %c0_9] : memref<30x8x128xf32, #tpu.memory_space<vmem>>, vector<1x8x128xf32>
    %33 = vector.shape_cast %32 : vector<1x8x128xf32> to vector<8x128xf32>
    %c13_10 = arith.constant 13 : index
    %34 = arith.index_cast %2 : i32 to index
    %c0_11 = arith.constant 0 : index
    %35 = vector.load %arg2[%c13_10, %34, %c0_11] : memref<30x8x128xf32, #tpu.memory_space<vmem>>, vector<1x8x128xf32>
    %36 = vector.shape_cast %35 : vector<1x8x128xf32> to vector<8x128xf32>
    %37 = arith.subf %33, %36 : vector<8x128xf32>
    %38 = arith.mulf %37, %37 : vector<8x128xf32>
    %39 = arith.addf %30, %38 : vector<8x128xf32>
    %c14 = arith.constant 14 : index
    %40 = arith.index_cast %2 : i32 to index
    %c0_12 = arith.constant 0 : index
    %41 = vector.load %arg1[%c14, %40, %c0_12] : memref<30x8x128xf32, #tpu.memory_space<vmem>>, vector<1x8x128xf32>
    %42 = vector.shape_cast %41 : vector<1x8x128xf32> to vector<8x128xf32>
    %c14_13 = arith.constant 14 : index
    %43 = arith.index_cast %2 : i32 to index
    %c0_14 = arith.constant 0 : index
    %44 = vector.load %arg2[%c14_13, %43, %c0_14] : memref<30x8x128xf32, #tpu.memory_space<vmem>>, vector<1x8x128xf32>
    %45 = vector.shape_cast %44 : vector<1x8x128xf32> to vector<8x128xf32>
    %46 = arith.subf %42, %45 : vector<8x128xf32>
    %47 = arith.mulf %46, %46 : vector<8x128xf32>
    %48 = arith.addf %39, %47 : vector<8x128xf32>
    %c15 = arith.constant 15 : index
    %49 = arith.index_cast %2 : i32 to index
    %c0_15 = arith.constant 0 : index
    %50 = vector.load %arg1[%c15, %49, %c0_15] : memref<30x8x128xf32, #tpu.memory_space<vmem>>, vector<1x8x128xf32>
    %51 = vector.shape_cast %50 : vector<1x8x128xf32> to vector<8x128xf32>
    %c15_16 = arith.constant 15 : index
    %52 = arith.index_cast %2 : i32 to index
    %c0_17 = arith.constant 0 : index
    %53 = vector.load %arg2[%c15_16, %52, %c0_17] : memref<30x8x128xf32, #tpu.memory_space<vmem>>, vector<1x8x128xf32>
    %54 = vector.shape_cast %53 : vector<1x8x128xf32> to vector<8x128xf32>
    %55 = arith.subf %51, %54 : vector<8x128xf32>
    %56 = arith.mulf %55, %55 : vector<8x128xf32>
    %57 = arith.addf %48, %56 : vector<8x128xf32>
    %c16 = arith.constant 16 : index
    %58 = arith.index_cast %2 : i32 to index
    %c0_18 = arith.constant 0 : index
    %59 = vector.load %arg1[%c16, %58, %c0_18] : memref<30x8x128xf32, #tpu.memory_space<vmem>>, vector<1x8x128xf32>
    %60 = vector.shape_cast %59 : vector<1x8x128xf32> to vector<8x128xf32>
    %c16_19 = arith.constant 16 : index
    %61 = arith.index_cast %2 : i32 to index
    %c0_20 = arith.constant 0 : index
    %62 = vector.load %arg2[%c16_19, %61, %c0_20] : memref<30x8x128xf32, #tpu.memory_space<vmem>>, vector<1x8x128xf32>
    %63 = vector.shape_cast %62 : vector<1x8x128xf32> to vector<8x128xf32>
    %64 = arith.subf %60, %63 : vector<8x128xf32>
    %65 = arith.mulf %64, %64 : vector<8x128xf32>
    %66 = arith.addf %57, %65 : vector<8x128xf32>
    %c17 = arith.constant 17 : index
    %67 = arith.index_cast %2 : i32 to index
    %c0_21 = arith.constant 0 : index
    %68 = vector.load %arg1[%c17, %67, %c0_21] : memref<30x8x128xf32, #tpu.memory_space<vmem>>, vector<1x8x128xf32>
    %69 = vector.shape_cast %68 : vector<1x8x128xf32> to vector<8x128xf32>
    %c17_22 = arith.constant 17 : index
    %70 = arith.index_cast %2 : i32 to index
    %c0_23 = arith.constant 0 : index
    %71 = vector.load %arg2[%c17_22, %70, %c0_23] : memref<30x8x128xf32, #tpu.memory_space<vmem>>, vector<1x8x128xf32>
    %72 = vector.shape_cast %71 : vector<1x8x128xf32> to vector<8x128xf32>
    %73 = arith.subf %69, %72 : vector<8x128xf32>
    %74 = arith.mulf %73, %73 : vector<8x128xf32>
    %75 = arith.addf %66, %74 : vector<8x128xf32>
    %c18 = arith.constant 18 : index
    %76 = arith.index_cast %2 : i32 to index
    %c0_24 = arith.constant 0 : index
    %77 = vector.load %arg1[%c18, %76, %c0_24] : memref<30x8x128xf32, #tpu.memory_space<vmem>>, vector<1x8x128xf32>
    %78 = vector.shape_cast %77 : vector<1x8x128xf32> to vector<8x128xf32>
    %c18_25 = arith.constant 18 : index
    %79 = arith.index_cast %2 : i32 to index
    %c0_26 = arith.constant 0 : index
    %80 = vector.load %arg2[%c18_25, %79, %c0_26] : memref<30x8x128xf32, #tpu.memory_space<vmem>>, vector<1x8x128xf32>
    %81 = vector.shape_cast %80 : vector<1x8x128xf32> to vector<8x128xf32>
    %82 = arith.subf %78, %81 : vector<8x128xf32>
    %83 = arith.mulf %82, %82 : vector<8x128xf32>
    %84 = arith.addf %75, %83 : vector<8x128xf32>
    %c19 = arith.constant 19 : index
    %85 = arith.index_cast %2 : i32 to index
    %c0_27 = arith.constant 0 : index
    %86 = vector.load %arg1[%c19, %85, %c0_27] : memref<30x8x128xf32, #tpu.memory_space<vmem>>, vector<1x8x128xf32>
    %87 = vector.shape_cast %86 : vector<1x8x128xf32> to vector<8x128xf32>
    %c19_28 = arith.constant 19 : index
    %88 = arith.index_cast %2 : i32 to index
    %c0_29 = arith.constant 0 : index
    %89 = vector.load %arg2[%c19_28, %88, %c0_29] : memref<30x8x128xf32, #tpu.memory_space<vmem>>, vector<1x8x128xf32>
    %90 = vector.shape_cast %89 : vector<1x8x128xf32> to vector<8x128xf32>
    %91 = arith.subf %87, %90 : vector<8x128xf32>
    %92 = arith.mulf %91, %91 : vector<8x128xf32>
    %93 = arith.addf %84, %92 : vector<8x128xf32>
    %c20 = arith.constant 20 : index
    %94 = arith.index_cast %2 : i32 to index
    %c0_30 = arith.constant 0 : index
    %95 = vector.load %arg1[%c20, %94, %c0_30] : memref<30x8x128xf32, #tpu.memory_space<vmem>>, vector<1x8x128xf32>
    %96 = vector.shape_cast %95 : vector<1x8x128xf32> to vector<8x128xf32>
    %c20_31 = arith.constant 20 : index
    %97 = arith.index_cast %2 : i32 to index
    %c0_32 = arith.constant 0 : index
    %98 = vector.load %arg2[%c20_31, %97, %c0_32] : memref<30x8x128xf32, #tpu.memory_space<vmem>>, vector<1x8x128xf32>
    %99 = vector.shape_cast %98 : vector<1x8x128xf32> to vector<8x128xf32>
    %100 = arith.subf %96, %99 : vector<8x128xf32>
    %101 = arith.mulf %100, %100 : vector<8x128xf32>
    %102 = arith.addf %93, %101 : vector<8x128xf32>
    %c21 = arith.constant 21 : index
    %103 = arith.index_cast %2 : i32 to index
    %c0_33 = arith.constant 0 : index
    %104 = vector.load %arg1[%c21, %103, %c0_33] : memref<30x8x128xf32, #tpu.memory_space<vmem>>, vector<1x8x128xf32>
    %105 = vector.shape_cast %104 : vector<1x8x128xf32> to vector<8x128xf32>
    %c21_34 = arith.constant 21 : index
    %106 = arith.index_cast %2 : i32 to index
    %c0_35 = arith.constant 0 : index
    %107 = vector.load %arg2[%c21_34, %106, %c0_35] : memref<30x8x128xf32, #tpu.memory_space<vmem>>, vector<1x8x128xf32>
    %108 = vector.shape_cast %107 : vector<1x8x128xf32> to vector<8x128xf32>
    %109 = arith.subf %105, %108 : vector<8x128xf32>
    %110 = arith.mulf %109, %109 : vector<8x128xf32>
    %111 = arith.addf %102, %110 : vector<8x128xf32>
    %c22 = arith.constant 22 : index
    %112 = arith.index_cast %2 : i32 to index
    %c0_36 = arith.constant 0 : index
    %113 = vector.load %arg1[%c22, %112, %c0_36] : memref<30x8x128xf32, #tpu.memory_space<vmem>>, vector<1x8x128xf32>
    %114 = vector.shape_cast %113 : vector<1x8x128xf32> to vector<8x128xf32>
    %c22_37 = arith.constant 22 : index
    %115 = arith.index_cast %2 : i32 to index
    %c0_38 = arith.constant 0 : index
    %116 = vector.load %arg2[%c22_37, %115, %c0_38] : memref<30x8x128xf32, #tpu.memory_space<vmem>>, vector<1x8x128xf32>
    %117 = vector.shape_cast %116 : vector<1x8x128xf32> to vector<8x128xf32>
    %118 = arith.subf %114, %117 : vector<8x128xf32>
    %119 = arith.mulf %118, %118 : vector<8x128xf32>
    %120 = arith.addf %111, %119 : vector<8x128xf32>
    %c23 = arith.constant 23 : index
    %121 = arith.index_cast %2 : i32 to index
    %c0_39 = arith.constant 0 : index
    %122 = vector.load %arg1[%c23, %121, %c0_39] : memref<30x8x128xf32, #tpu.memory_space<vmem>>, vector<1x8x128xf32>
    %123 = vector.shape_cast %122 : vector<1x8x128xf32> to vector<8x128xf32>
    %c23_40 = arith.constant 23 : index
    %124 = arith.index_cast %2 : i32 to index
    %c0_41 = arith.constant 0 : index
    %125 = vector.load %arg2[%c23_40, %124, %c0_41] : memref<30x8x128xf32, #tpu.memory_space<vmem>>, vector<1x8x128xf32>
    %126 = vector.shape_cast %125 : vector<1x8x128xf32> to vector<8x128xf32>
    %127 = arith.subf %123, %126 : vector<8x128xf32>
    %128 = arith.mulf %127, %127 : vector<8x128xf32>
    %129 = arith.addf %120, %128 : vector<8x128xf32>
    %c24 = arith.constant 24 : index
    %130 = arith.index_cast %2 : i32 to index
    %c0_42 = arith.constant 0 : index
    %131 = vector.load %arg1[%c24, %130, %c0_42] : memref<30x8x128xf32, #tpu.memory_space<vmem>>, vector<1x8x128xf32>
    %132 = vector.shape_cast %131 : vector<1x8x128xf32> to vector<8x128xf32>
    %c24_43 = arith.constant 24 : index
    %133 = arith.index_cast %2 : i32 to index
    %c0_44 = arith.constant 0 : index
    %134 = vector.load %arg2[%c24_43, %133, %c0_44] : memref<30x8x128xf32, #tpu.memory_space<vmem>>, vector<1x8x128xf32>
    %135 = vector.shape_cast %134 : vector<1x8x128xf32> to vector<8x128xf32>
    %136 = arith.subf %132, %135 : vector<8x128xf32>
    %137 = arith.mulf %136, %136 : vector<8x128xf32>
    %138 = arith.addf %129, %137 : vector<8x128xf32>
    %c25 = arith.constant 25 : index
    %139 = arith.index_cast %2 : i32 to index
    %c0_45 = arith.constant 0 : index
    %140 = vector.load %arg1[%c25, %139, %c0_45] : memref<30x8x128xf32, #tpu.memory_space<vmem>>, vector<1x8x128xf32>
    %141 = vector.shape_cast %140 : vector<1x8x128xf32> to vector<8x128xf32>
    %c25_46 = arith.constant 25 : index
    %142 = arith.index_cast %2 : i32 to index
    %c0_47 = arith.constant 0 : index
    %143 = vector.load %arg2[%c25_46, %142, %c0_47] : memref<30x8x128xf32, #tpu.memory_space<vmem>>, vector<1x8x128xf32>
    %144 = vector.shape_cast %143 : vector<1x8x128xf32> to vector<8x128xf32>
    %145 = arith.subf %141, %144 : vector<8x128xf32>
    %146 = arith.mulf %145, %145 : vector<8x128xf32>
    %147 = arith.addf %138, %146 : vector<8x128xf32>
    %c26 = arith.constant 26 : index
    %148 = arith.index_cast %2 : i32 to index
    %c0_48 = arith.constant 0 : index
    %149 = vector.load %arg1[%c26, %148, %c0_48] : memref<30x8x128xf32, #tpu.memory_space<vmem>>, vector<1x8x128xf32>
    %150 = vector.shape_cast %149 : vector<1x8x128xf32> to vector<8x128xf32>
    %c26_49 = arith.constant 26 : index
    %151 = arith.index_cast %2 : i32 to index
    %c0_50 = arith.constant 0 : index
    %152 = vector.load %arg2[%c26_49, %151, %c0_50] : memref<30x8x128xf32, #tpu.memory_space<vmem>>, vector<1x8x128xf32>
    %153 = vector.shape_cast %152 : vector<1x8x128xf32> to vector<8x128xf32>
    %154 = arith.subf %150, %153 : vector<8x128xf32>
    %155 = arith.mulf %154, %154 : vector<8x128xf32>
    %156 = arith.addf %147, %155 : vector<8x128xf32>
    %c27 = arith.constant 27 : index
    %157 = arith.index_cast %2 : i32 to index
    %c0_51 = arith.constant 0 : index
    %158 = vector.load %arg1[%c27, %157, %c0_51] : memref<30x8x128xf32, #tpu.memory_space<vmem>>, vector<1x8x128xf32>
    %159 = vector.shape_cast %158 : vector<1x8x128xf32> to vector<8x128xf32>
    %c27_52 = arith.constant 27 : index
    %160 = arith.index_cast %2 : i32 to index
    %c0_53 = arith.constant 0 : index
    %161 = vector.load %arg2[%c27_52, %160, %c0_53] : memref<30x8x128xf32, #tpu.memory_space<vmem>>, vector<1x8x128xf32>
    %162 = vector.shape_cast %161 : vector<1x8x128xf32> to vector<8x128xf32>
    %163 = arith.subf %159, %162 : vector<8x128xf32>
    %164 = arith.mulf %163, %163 : vector<8x128xf32>
    %165 = arith.addf %156, %164 : vector<8x128xf32>
    %c28 = arith.constant 28 : index
    %166 = arith.index_cast %2 : i32 to index
    %c0_54 = arith.constant 0 : index
    %167 = vector.load %arg1[%c28, %166, %c0_54] : memref<30x8x128xf32, #tpu.memory_space<vmem>>, vector<1x8x128xf32>
    %168 = vector.shape_cast %167 : vector<1x8x128xf32> to vector<8x128xf32>
    %c28_55 = arith.constant 28 : index
    %169 = arith.index_cast %2 : i32 to index
    %c0_56 = arith.constant 0 : index
    %170 = vector.load %arg2[%c28_55, %169, %c0_56] : memref<30x8x128xf32, #tpu.memory_space<vmem>>, vector<1x8x128xf32>
    %171 = vector.shape_cast %170 : vector<1x8x128xf32> to vector<8x128xf32>
    %172 = arith.subf %168, %171 : vector<8x128xf32>
    %173 = arith.mulf %172, %172 : vector<8x128xf32>
    %174 = arith.addf %165, %173 : vector<8x128xf32>
    %c29 = arith.constant 29 : index
    %175 = arith.index_cast %2 : i32 to index
    %c0_57 = arith.constant 0 : index
    %176 = vector.load %arg1[%c29, %175, %c0_57] : memref<30x8x128xf32, #tpu.memory_space<vmem>>, vector<1x8x128xf32>
    %177 = vector.shape_cast %176 : vector<1x8x128xf32> to vector<8x128xf32>
    %c29_58 = arith.constant 29 : index
    %178 = arith.index_cast %2 : i32 to index
    %c0_59 = arith.constant 0 : index
    %179 = vector.load %arg2[%c29_58, %178, %c0_59] : memref<30x8x128xf32, #tpu.memory_space<vmem>>, vector<1x8x128xf32>
    %180 = vector.shape_cast %179 : vector<1x8x128xf32> to vector<8x128xf32>
    %181 = arith.subf %177, %180 : vector<8x128xf32>
    %182 = arith.mulf %181, %181 : vector<8x128xf32>
    %183 = arith.addf %174, %182 : vector<8x128xf32>
    %c4 = arith.constant 4 : index
    %184 = arith.index_cast %2 : i32 to index
    %c0_60 = arith.constant 0 : index
    %185 = vector.load %arg1[%c4, %184, %c0_60] : memref<30x8x128xf32, #tpu.memory_space<vmem>>, vector<1x8x128xf32>
    %186 = vector.shape_cast %185 : vector<1x8x128xf32> to vector<8x128xf32>
    %c9 = arith.constant 9 : index
    %187 = arith.index_cast %2 : i32 to index
    %c0_61 = arith.constant 0 : index
    %188 = vector.load %arg1[%c9, %187, %c0_61] : memref<30x8x128xf32, #tpu.memory_space<vmem>>, vector<1x8x128xf32>
    %189 = vector.shape_cast %188 : vector<1x8x128xf32> to vector<8x128xf32>
    %c4_62 = arith.constant 4 : index
    %190 = arith.index_cast %2 : i32 to index
    %c0_63 = arith.constant 0 : index
    %191 = vector.load %arg2[%c4_62, %190, %c0_63] : memref<30x8x128xf32, #tpu.memory_space<vmem>>, vector<1x8x128xf32>
    %192 = vector.shape_cast %191 : vector<1x8x128xf32> to vector<8x128xf32>
    %193 = arith.subf %186, %192 : vector<8x128xf32>
    %c9_64 = arith.constant 9 : index
    %194 = arith.index_cast %2 : i32 to index
    %c0_65 = arith.constant 0 : index
    %195 = vector.load %arg2[%c9_64, %194, %c0_65] : memref<30x8x128xf32, #tpu.memory_space<vmem>>, vector<1x8x128xf32>
    %196 = vector.shape_cast %195 : vector<1x8x128xf32> to vector<8x128xf32>
    %197 = arith.subf %189, %196 : vector<8x128xf32>
    %198 = arith.mulf %193, %193 : vector<8x128xf32>
    %199 = arith.mulf %197, %197 : vector<8x128xf32>
    %200 = arith.addf %198, %199 : vector<8x128xf32>
    %cst_66 = arith.constant 0.000000e+00 : f32
    %201 = vector.broadcast %cst_66 : f32 to vector<8x128xf32>
    %202 = arith.cmpf ogt, %192, %201 : vector<8x128xf32>
    %cst_67 = arith.constant 0.000000e+00 : f32
    %203 = vector.broadcast %cst_67 : f32 to vector<8x128xf32>
    %204 = arith.cmpf oeq, %192, %203 : vector<8x128xf32>
    %c2 = arith.constant 2 : index
    %205 = arith.index_cast %2 : i32 to index
    %c0_68 = arith.constant 0 : index
    %206 = vector.load %arg1[%c2, %205, %c0_68] : memref<30x8x128xf32, #tpu.memory_space<vmem>>, vector<1x8x128xf32>
    %207 = vector.shape_cast %206 : vector<1x8x128xf32> to vector<8x128xf32>
    %c3 = arith.constant 3 : index
    %208 = arith.index_cast %2 : i32 to index
    %c0_69 = arith.constant 0 : index
    %209 = vector.load %arg1[%c3, %208, %c0_69] : memref<30x8x128xf32, #tpu.memory_space<vmem>>, vector<1x8x128xf32>
    %210 = vector.shape_cast %209 : vector<1x8x128xf32> to vector<8x128xf32>
    %c7 = arith.constant 7 : index
    %211 = arith.index_cast %2 : i32 to index
    %c0_70 = arith.constant 0 : index
    %212 = vector.load %arg1[%c7, %211, %c0_70] : memref<30x8x128xf32, #tpu.memory_space<vmem>>, vector<1x8x128xf32>
    %213 = vector.shape_cast %212 : vector<1x8x128xf32> to vector<8x128xf32>
    %c8 = arith.constant 8 : index
    %214 = arith.index_cast %2 : i32 to index
    %c0_71 = arith.constant 0 : index
    %215 = vector.load %arg1[%c8, %214, %c0_71] : memref<30x8x128xf32, #tpu.memory_space<vmem>>, vector<1x8x128xf32>
    %216 = vector.shape_cast %215 : vector<1x8x128xf32> to vector<8x128xf32>
    %c2_72 = arith.constant 2 : index
    %217 = arith.index_cast %2 : i32 to index
    %c0_73 = arith.constant 0 : index
    %218 = vector.load %arg2[%c2_72, %217, %c0_73] : memref<30x8x128xf32, #tpu.memory_space<vmem>>, vector<1x8x128xf32>
    %219 = vector.shape_cast %218 : vector<1x8x128xf32> to vector<8x128xf32>
    %c3_74 = arith.constant 3 : index
    %220 = arith.index_cast %2 : i32 to index
    %c0_75 = arith.constant 0 : index
    %221 = vector.load %arg2[%c3_74, %220, %c0_75] : memref<30x8x128xf32, #tpu.memory_space<vmem>>, vector<1x8x128xf32>
    %222 = vector.shape_cast %221 : vector<1x8x128xf32> to vector<8x128xf32>
    %cst_76 = arith.constant 0.142857149 : f32
    %223 = vector.broadcast %cst_76 : f32 to vector<8x128xf32>
    %224 = arith.mulf %207, %223 : vector<8x128xf32>
    %cst_77 = arith.constant 0.142857149 : f32
    %225 = vector.broadcast %cst_77 : f32 to vector<8x128xf32>
    %226 = arith.mulf %213, %225 : vector<8x128xf32>
    %227 = arith.mulf %207, %207 : vector<8x128xf32>
    %228 = arith.mulf %210, %210 : vector<8x128xf32>
    %229 = arith.mulf %213, %213 : vector<8x128xf32>
    %230 = arith.mulf %216, %216 : vector<8x128xf32>
    %cst_78 = arith.constant 5.000000e-01 : f32
    %231 = vector.broadcast %cst_78 : f32 to vector<8x128xf32>
    %232 = arith.mulf %231, %227 : vector<8x128xf32>
    %cst_79 = arith.constant 5.000000e-01 : f32
    %233 = vector.broadcast %cst_79 : f32 to vector<8x128xf32>
    %234 = arith.mulf %233, %228 : vector<8x128xf32>
    %cst_80 = arith.constant 5.000000e-01 : f32
    %235 = vector.broadcast %cst_80 : f32 to vector<8x128xf32>
    %236 = arith.mulf %235, %229 : vector<8x128xf32>
    %cst_81 = arith.constant 5.000000e-01 : f32
    %237 = vector.broadcast %cst_81 : f32 to vector<8x128xf32>
    %238 = arith.mulf %237, %230 : vector<8x128xf32>
    %cst_82 = arith.constant 0.142857149 : f32
    %239 = vector.broadcast %cst_82 : f32 to vector<8x128xf32>
    %240 = arith.mulf %219, %239 : vector<8x128xf32>
    %cst_83 = arith.constant 5.000000e-01 : f32
    %241 = vector.broadcast %cst_83 : f32 to vector<8x128xf32>
    %242 = arith.mulf %241, %219 : vector<8x128xf32>
    %243 = arith.subf %240, %242 : vector<8x128xf32>
    %cst_84 = arith.constant 5.000000e-01 : f32
    %244 = vector.broadcast %cst_84 : f32 to vector<8x128xf32>
    %245 = arith.mulf %244, %222 : vector<8x128xf32>
    %246 = arith.subf %240, %245 : vector<8x128xf32>
    %cst_85 = arith.constant 5.000000e-01 : f32
    %247 = vector.broadcast %cst_85 : f32 to vector<8x128xf32>
    %248 = arith.mulf %247, %219 : vector<8x128xf32>
    %249 = arith.addf %240, %248 : vector<8x128xf32>
    %cst_86 = arith.constant 5.000000e-01 : f32
    %250 = vector.broadcast %cst_86 : f32 to vector<8x128xf32>
    %251 = arith.mulf %250, %222 : vector<8x128xf32>
    %252 = arith.addf %240, %251 : vector<8x128xf32>
    %253 = arith.mulf %219, %222 : vector<8x128xf32>
    %254 = arith.mulf %227, %228 : vector<8x128xf32>
    %255 = arith.addf %224, %232 : vector<8x128xf32>
    %256 = arith.minimumf %255, %249 : vector<8x128xf32>
    %257 = arith.subf %224, %232 : vector<8x128xf32>
    %258 = arith.maximumf %257, %243 : vector<8x128xf32>
    %259 = arith.subf %256, %258 : vector<8x128xf32>
    %cst_87 = arith.constant 0.000000e+00 : f32
    %260 = vector.broadcast %cst_87 : f32 to vector<8x128xf32>
    %261 = arith.maximumf %259, %260 : vector<8x128xf32>
    %262 = arith.addf %226, %234 : vector<8x128xf32>
    %263 = arith.minimumf %262, %252 : vector<8x128xf32>
    %264 = arith.subf %226, %234 : vector<8x128xf32>
    %265 = arith.maximumf %264, %246 : vector<8x128xf32>
    %266 = arith.subf %263, %265 : vector<8x128xf32>
    %cst_88 = arith.constant 0.000000e+00 : f32
    %267 = vector.broadcast %cst_88 : f32 to vector<8x128xf32>
    %268 = arith.maximumf %266, %267 : vector<8x128xf32>
    %269 = arith.mulf %261, %268 : vector<8x128xf32>
    %270 = arith.addf %254, %253 : vector<8x128xf32>
    %271 = arith.subf %270, %269 : vector<8x128xf32>
    %cst_89 = arith.constant 1.000000e-10 : f32
    %272 = vector.broadcast %cst_89 : f32 to vector<8x128xf32>
    %273 = arith.addf %271, %272 : vector<8x128xf32>
    %274 = arith.mulf %229, %230 : vector<8x128xf32>
    %275 = arith.addf %224, %236 : vector<8x128xf32>
    %276 = arith.minimumf %275, %249 : vector<8x128xf32>
    %277 = arith.subf %224, %236 : vector<8x128xf32>
    %278 = arith.maximumf %277, %243 : vector<8x128xf32>
    %279 = arith.subf %276, %278 : vector<8x128xf32>
    %cst_90 = arith.constant 0.000000e+00 : f32
    %280 = vector.broadcast %cst_90 : f32 to vector<8x128xf32>
    %281 = arith.maximumf %279, %280 : vector<8x128xf32>
    %282 = arith.addf %226, %238 : vector<8x128xf32>
    %283 = arith.minimumf %282, %252 : vector<8x128xf32>
    %284 = arith.subf %226, %238 : vector<8x128xf32>
    %285 = arith.maximumf %284, %246 : vector<8x128xf32>
    %286 = arith.subf %283, %285 : vector<8x128xf32>
    %cst_91 = arith.constant 0.000000e+00 : f32
    %287 = vector.broadcast %cst_91 : f32 to vector<8x128xf32>
    %288 = arith.maximumf %286, %287 : vector<8x128xf32>
    %289 = arith.mulf %281, %288 : vector<8x128xf32>
    %290 = arith.addf %274, %253 : vector<8x128xf32>
    %291 = arith.subf %290, %289 : vector<8x128xf32>
    %cst_92 = arith.constant 1.000000e-10 : f32
    %292 = vector.broadcast %cst_92 : f32 to vector<8x128xf32>
    %293 = arith.addf %291, %292 : vector<8x128xf32>
    %294 = arith.mulf %289, %273 : vector<8x128xf32>
    %295 = arith.mulf %269, %293 : vector<8x128xf32>
    %296 = arith.cmpf ogt, %294, %295 : vector<8x128xf32>
    %297 = arith.select %296, %293, %273 : vector<8x128xi1>, vector<8x128xf32>
    %298 = tpu.reciprocal %297 {approx = true} : vector<8x128xf32> -> vector<8x128xf32>
    %299 = arith.mulf %297, %298 : vector<8x128xf32>
    %cst_93 = arith.constant 2.000000e+00 : f32
    %300 = vector.broadcast %cst_93 : f32 to vector<8x128xf32>
    %301 = arith.subf %300, %299 : vector<8x128xf32>
    %302 = arith.mulf %298, %301 : vector<8x128xf32>
    %303 = arith.select %296, %289, %269 : vector<8x128xi1>, vector<8x128xf32>
    %304 = arith.mulf %303, %302 : vector<8x128xf32>
    %c5 = arith.constant 5 : index
    %305 = arith.index_cast %2 : i32 to index
    %c0_94 = arith.constant 0 : index
    %306 = vector.load %arg1[%c5, %305, %c0_94] : memref<30x8x128xf32, #tpu.memory_space<vmem>>, vector<1x8x128xf32>
    %307 = vector.shape_cast %306 : vector<1x8x128xf32> to vector<8x128xf32>
    %c0_95 = arith.constant 0 : index
    %308 = arith.index_cast %2 : i32 to index
    %c0_96 = arith.constant 0 : index
    %309 = vector.load %arg1[%c0_95, %308, %c0_96] : memref<30x8x128xf32, #tpu.memory_space<vmem>>, vector<1x8x128xf32>
    %310 = vector.shape_cast %309 : vector<1x8x128xf32> to vector<8x128xf32>
    %311 = arith.select %296, %307, %310 : vector<8x128xi1>, vector<8x128xf32>
    %c5_97 = arith.constant 5 : index
    %312 = arith.index_cast %2 : i32 to index
    %c0_98 = arith.constant 0 : index
    %313 = vector.load %arg2[%c5_97, %312, %c0_98] : memref<30x8x128xf32, #tpu.memory_space<vmem>>, vector<1x8x128xf32>
    %314 = vector.shape_cast %313 : vector<1x8x128xf32> to vector<8x128xf32>
    %c0_99 = arith.constant 0 : index
    %315 = arith.index_cast %2 : i32 to index
    %c0_100 = arith.constant 0 : index
    %316 = vector.load %arg2[%c0_99, %315, %c0_100] : memref<30x8x128xf32, #tpu.memory_space<vmem>>, vector<1x8x128xf32>
    %317 = vector.shape_cast %316 : vector<1x8x128xf32> to vector<8x128xf32>
    %318 = arith.select %296, %314, %317 : vector<8x128xi1>, vector<8x128xf32>
    %319 = arith.subf %311, %318 : vector<8x128xf32>
    %c6 = arith.constant 6 : index
    %320 = arith.index_cast %2 : i32 to index
    %c0_101 = arith.constant 0 : index
    %321 = vector.load %arg1[%c6, %320, %c0_101] : memref<30x8x128xf32, #tpu.memory_space<vmem>>, vector<1x8x128xf32>
    %322 = vector.shape_cast %321 : vector<1x8x128xf32> to vector<8x128xf32>
    %c1 = arith.constant 1 : index
    %323 = arith.index_cast %2 : i32 to index
    %c0_102 = arith.constant 0 : index
    %324 = vector.load %arg1[%c1, %323, %c0_102] : memref<30x8x128xf32, #tpu.memory_space<vmem>>, vector<1x8x128xf32>
    %325 = vector.shape_cast %324 : vector<1x8x128xf32> to vector<8x128xf32>
    %326 = arith.select %296, %322, %325 : vector<8x128xi1>, vector<8x128xf32>
    %c6_103 = arith.constant 6 : index
    %327 = arith.index_cast %2 : i32 to index
    %c0_104 = arith.constant 0 : index
    %328 = vector.load %arg2[%c6_103, %327, %c0_104] : memref<30x8x128xf32, #tpu.memory_space<vmem>>, vector<1x8x128xf32>
    %329 = vector.shape_cast %328 : vector<1x8x128xf32> to vector<8x128xf32>
    %c1_105 = arith.constant 1 : index
    %330 = arith.index_cast %2 : i32 to index
    %c0_106 = arith.constant 0 : index
    %331 = vector.load %arg2[%c1_105, %330, %c0_106] : memref<30x8x128xf32, #tpu.memory_space<vmem>>, vector<1x8x128xf32>
    %332 = vector.shape_cast %331 : vector<1x8x128xf32> to vector<8x128xf32>
    %333 = arith.select %296, %329, %332 : vector<8x128xi1>, vector<8x128xf32>
    %334 = arith.subf %326, %333 : vector<8x128xf32>
    %335 = arith.select %296, %213, %207 : vector<8x128xi1>, vector<8x128xf32>
    %c7_107 = arith.constant 7 : index
    %336 = arith.index_cast %2 : i32 to index
    %c0_108 = arith.constant 0 : index
    %337 = vector.load %arg2[%c7_107, %336, %c0_108] : memref<30x8x128xf32, #tpu.memory_space<vmem>>, vector<1x8x128xf32>
    %338 = vector.shape_cast %337 : vector<1x8x128xf32> to vector<8x128xf32>
    %339 = arith.select %296, %338, %219 : vector<8x128xi1>, vector<8x128xf32>
    %340 = math.sqrt %339 : vector<8x128xf32>
    %341 = arith.subf %335, %340 : vector<8x128xf32>
    %342 = arith.select %296, %216, %210 : vector<8x128xi1>, vector<8x128xf32>
    %c8_109 = arith.constant 8 : index
    %343 = arith.index_cast %2 : i32 to index
    %c0_110 = arith.constant 0 : index
    %344 = vector.load %arg2[%c8_109, %343, %c0_110] : memref<30x8x128xf32, #tpu.memory_space<vmem>>, vector<1x8x128xf32>
    %345 = vector.shape_cast %344 : vector<1x8x128xf32> to vector<8x128xf32>
    %346 = arith.select %296, %345, %222 : vector<8x128xi1>, vector<8x128xf32>
    %347 = math.sqrt %346 : vector<8x128xf32>
    %348 = arith.subf %342, %347 : vector<8x128xf32>
    %349 = arith.select %296, %189, %186 : vector<8x128xi1>, vector<8x128xf32>
    %350 = arith.subf %349, %304 : vector<8x128xf32>
    %351 = arith.mulf %319, %319 : vector<8x128xf32>
    %352 = arith.mulf %334, %334 : vector<8x128xf32>
    %353 = arith.addf %351, %352 : vector<8x128xf32>
    %354 = arith.mulf %341, %341 : vector<8x128xf32>
    %355 = arith.addf %353, %354 : vector<8x128xf32>
    %356 = arith.mulf %348, %348 : vector<8x128xf32>
    %357 = arith.addf %355, %356 : vector<8x128xf32>
    %cst_111 = arith.constant 5.000000e+00 : f32
    %358 = vector.broadcast %cst_111 : f32 to vector<8x128xf32>
    %359 = arith.mulf %358, %357 : vector<8x128xf32>
    %360 = arith.mulf %350, %350 : vector<8x128xf32>
    %cst_112 = arith.constant 1.000000e+00 : f32
    %361 = vector.broadcast %cst_112 : f32 to vector<8x128xf32>
    %362 = arith.mulf %361, %360 : vector<8x128xf32>
    %363 = arith.addf %359, %362 : vector<8x128xf32>
    %cst_113 = arith.constant 1.000000e+00 : f32
    %364 = vector.broadcast %cst_113 : f32 to vector<8x128xf32>
    %365 = arith.mulf %364, %183 : vector<8x128xf32>
    %366 = arith.addf %363, %365 : vector<8x128xf32>
    %cst_114 = arith.constant 0.000000e+00 : f32
    %367 = vector.broadcast %cst_114 : f32 to vector<8x128xf32>
    %368 = arith.select %202, %366, %367 : vector<8x128xi1>, vector<8x128xf32>
    %cst_115 = arith.constant 5.000000e-01 : f32
    %369 = vector.broadcast %cst_115 : f32 to vector<8x128xf32>
    %370 = arith.mulf %369, %200 : vector<8x128xf32>
    %cst_116 = arith.constant 0.000000e+00 : f32
    %371 = vector.broadcast %cst_116 : f32 to vector<8x128xf32>
    %372 = arith.select %204, %370, %371 : vector<8x128xi1>, vector<8x128xf32>
    %373 = arith.addf %368, %372 : vector<8x128xf32>
    %374 = arith.addf %0, %373 : vector<8x128xf32>
    %c1_i32 = arith.constant 1 : i32
    %c0_117 = arith.constant 0 : index
    %c0_118 = arith.constant 0 : index
    %375 = vector.load %arg3[%c0_117, %c0_118] : memref<8x128xf32, #tpu.memory_space<vmem>>, vector<8x128xf32>
    tpu.vector_store %arg3[%c0_117, %c0_118], %374 {strides = array<i32>} : memref<8x128xf32, #tpu.memory_space<vmem>>, vector<8x128xf32>,
    return
  }
  func.func @transform_0(%arg0: i32) -> (i32, i32, i32) {
    %c0_i32 = arith.constant 0 : i32
    %c0_i32_0 = arith.constant 0 : i32
    %c0_i32_1 = arith.constant 0 : i32
    return %c0_i32, %arg0, %c0_i32_0 : i32, i32, i32
  }
  func.func @transform_1(%arg0: i32) -> (i32, i32, i32) {
    %c0_i32 = arith.constant 0 : i32
    %c0_i32_0 = arith.constant 0 : i32
    %c0_i32_1 = arith.constant 0 : i32
    return %c0_i32, %arg0, %c0_i32_0 : i32, i32, i32
  }
  func.func @transform_2(%arg0: i32) -> (i32, i32) {
    %c0_i32 = arith.constant 0 : i32
    %c0_i32_0 = arith.constant 0 : i32
    return %arg0, %c0_i32 : i32, i32
  }
}

</mosaic_0001>

<bundles_post_ra>
// kernel: tpu_custom_call.1
= control target key start
LH: loop header
LB: loop body
LE: loop exit
PB: predicated region body
PF: predicated region fallthrough
CT: control target
= control target key end

     0   :  { %7 = vsyncpa [#allocation3], 0  ;;  %s661_s0 = inlined_call_operand.hbm [shape: f32[30,8,128], index: 0, kind: input, shape index: {}]   ;;  %s662_s1 = inlined_call_operand.hbm [shape: f32[30,8,128], index: 1, kind: input, shape index: {}]   ;;  %s663_s2 = inlined_call_operand.hbm [shape: f32[8,128], index: 2, kind: output, shape index: {}]  }
   0x1   :  { %8 = vsyncpa [#allocation6], 0 }
   0x2   :  { %9 = vsyncpa [#allocation4], 0  ;;  %s14_s11 = sshll.u32 %s661_s0, 4  ;;  %s540_s12 = smov [#allocation2]   ;;  %s15_s11 = int_to_ptr.hbm [resolvable:$true] %s14_s11 }
   0x3   :  { %s16_s13 = sshll.u32 %s540_s12, 4  ;;  %s27_s16 = sshll.u32 %s662_s1, 4  ;;  %s17_s13 = int_to_ptr.vmem [resolvable:$true] %s16_s13  ;;  %s28_s16 = int_to_ptr.hbm [resolvable:$true] %s27_s16 }
   0x4   :  { %s541_s17 = smov 128   ;;  %s542_s18 = smov 8  }
   0x5   :  { %22 = dma.hbm_to_vmem [thread:$0]  %s15_s11, 3840, %s17_s13, [#allocation3], %s541_s17, %s541_s17, %s542_s18  }
   0x6   :  { %s543_s19 = smov [#allocation5]  }
   0x7   :  { %s29_s20 = sshll.u32 %s543_s19, 4  ;;  %s30_s20 = int_to_ptr.vmem [resolvable:$true] %s29_s20 }
   0x8   :  { %35 = dma.hbm_to_vmem [thread:$0]  %s28_s16, 3840, %s30_s20, [#allocation6], %s541_s17, %s541_s17, %s542_s18  }
   0x9   :  { %534 = dma.done.wait [#allocation3], 3840  }
   0xa   :  { %535 = vsyncadd [#allocation3], 4294963456 }
   0xb   :  { %536 = dma.done.wait [#allocation6], 3840  }
   0xc   :  { %537 = vsyncadd [#allocation6], 4294963456  ;;  %v46_v0 = vld [vmem:[#allocation2 + $0x50] sm:$0xff]  ;;  %v48_v1 = vld [vmem:[#allocation5 + $0x50] sm:$0xff]  ;;  %s544_s0 = smov [#allocation7]   ;;  %s382_s23 = sshll.u32 %s663_s2, 4  ;;  %s383_s23 = int_to_ptr.hbm [resolvable:$true] %s382_s23 }
   0xd   :  { %v54_v2 = vld [vmem:[#allocation2 + $0x58] sm:$0xff]  ;;  %v49_v3 = vsub.f32 %v46_v0, %v48_v1  ;;  %v56_v4 = vld [vmem:[#allocation5 + $0x58] sm:$0xff]  ;;  %v62_v5 = vld [vmem:[#allocation2 + $0x60] sm:$0xff]  ;;  %s380_s1 = sshll.u32 %s544_s0, 4  ;;  %s381_s1 = int_to_ptr.vmem [resolvable:$true] %s380_s1 }
   0xe   :  { %v64_v6 = vld [vmem:[#allocation5 + $0x60] sm:$0xff]  ;;  %v57_v7 = vsub.f32 %v54_v2, %v56_v4  ;;  %v70_v9 = vld [vmem:[#allocation2 + $0x68] sm:$0xff]  ;;  %v72_v10 = vld [vmem:[#allocation5 + $0x68] sm:$0xff] }
   0xf   :  { %v65_v8 = vsub.f32 %v62_v5, %v64_v6  ;;  %v78_v11 = vld [vmem:[#allocation2 + $0x70] sm:$0xff]  ;;  %v50_v12 = vmul.f32 %v49_v3, %v49_v3  ;;  %v73_v13 = vsub.f32 %v70_v9, %v72_v10  ;;  %v80_v14 = vld [vmem:[#allocation5 + $0x70] sm:$0xff]  ;;  %v86_v20 = vld [vmem:[#allocation2 + $0x78] sm:$0xff] }
  0x10   :  { %v58_v15 = vmul.f32 %v57_v7, %v57_v7  ;;  %v81_v17 = vsub.f32 %v78_v11, %v80_v14  ;;  %v88_v21 = vld [vmem:[#allocation5 + $0x78] sm:$0xff]  ;;  %v94_v26 = vld [vmem:[#allocation2 + $0x80] sm:$0xff]  ;;  %v96_v27 = vld [vmem:[#allocation5 + $0x80] sm:$0xff] }
  0x11   :  { %v66_v16 = vmul.f32 %v65_v8, %v65_v8  ;;  %v74_v19 = vmul.f32 %v73_v13, %v73_v13  ;;  %v89_v24 = vsub.f32 %v86_v20, %v88_v21  ;;  %v97_v30 = vsub.f32 %v94_v26, %v96_v27  ;;  %v102_v31 = vld [vmem:[#allocation2 + $0x88] sm:$0xff]  ;;  %v104_v32 = vld [vmem:[#allocation5 + $0x88] sm:$0xff]  ;;  %v566_v33 = vld [vmem:[#allocation2 + $0x10] sm:$0xff] }
  0x12   :  { %v59_v18 = vadd.f32 %v58_v15, %v50_v12  ;;  %v82_v23 = vmul.f32 %v81_v17, %v81_v17  ;;  %v568_v34 = vld [vmem:[#allocation2 + $0x18] sm:$0xff]  ;;  %v572_v36 = vld [vmem:[#allocation2 + $0x40] sm:$0xff]  ;;  %v105_v37 = vsub.f32 %v102_v31, %v104_v32  ;;  %v110_v38 = vld [vmem:[#allocation2 + $0x90] sm:$0xff]  ;;  %v239_v45 = vmul.f32 %v566_v33, %v566_v33 }
  0x13   :  { %v90_v29 = vmul.f32 %v89_v24, %v89_v24  ;;  %v570_v35 = vld [vmem:[#allocation2 + $0x38] sm:$0xff]  ;;  %v574_v39 = vld [vmem:[#allocation5 + $0x10] sm:$0xff]  ;;  %v98_v41 = vmul.f32 %v97_v30, %v97_v30  ;;  %v120_v44 = vld [vmem:[#allocation5 + $0x98] sm:$0xff]  ;;  %v237_v47 = vmul.f32 0.14285715, %v566_v33  ;;  %v240_v48 = vmul.f32 %v568_v34, %v568_v34 }
  0x14   :  { %v67_v22 = vadd.f32 %v66_v16, %v59_v18  ;;  %v112_v42 = vld [vmem:[#allocation5 + $0x90] sm:$0xff]  ;;  %v118_v43 = vld [vmem:[#allocation2 + $0x98] sm:$0xff]  ;;  %v578_v46 = vld [vmem:[#allocation5 + $0x18] sm:$0xff]  ;;  %v241_v49 = vmul.f32 %v570_v35, %v570_v35  ;;  %v242_v50 = vmul.f32 %v572_v36, %v572_v36  ;;  %v238_v51 = vmul.f32 0.14285715, %v570_v35 }
  0x15   :  { %v243_v52 = vmul.f32 0.5, %v239_v45  ;;  %v247_v53 = vmul.f32 0.14285715, %v574_v39  ;;  %v248_v54 = vmul.f32 0.5, %v574_v39  ;;  %v106_v55 = vmul.f32 %v105_v37, %v105_v37  ;;  %v128_v20 = vld [vmem:[#allocation5 + $0xa0] sm:$0xff] }
  0x16   :  { %v75_v25 = vadd.f32 %v74_v19, %v67_v22  ;;  %v113_v56 = vsub.f32 %v110_v38, %v112_v42  ;;  %v121_v57 = vsub.f32 %v118_v43, %v120_v44  ;;  %v244_v58 = vmul.f32 0.5, %v240_v48  ;;  %v126_v19 = vld [vmem:[#allocation2 + $0xa0] sm:$0xff] }
  0x17   :  { %v245_v59 = vmul.f32 0.5, %v241_v49  ;;  %v249_v60 = vsub.f32 %v247_v53, %v248_v54  ;;  %v250_v61 = vmul.f32 0.5, %v578_v46  ;;  %v252_v62 = vadd.f32 %v248_v54, %v247_v53  ;;  %v142_v54 = vld [vmem:[#allocation2 + $0xb0] sm:$0xff] }
  0x18   :  { %v83_v28 = vadd.f32 %v82_v23, %v75_v25  ;;  %v246_v0 = vmul.f32 0.5, %v242_v50  ;;  %v256_v1 = vadd.f32 %v243_v52, %v237_v47  ;;  %v258_v2 = vsub.f32 %v237_v47, %v243_v52 }
  0x19   :  { %v251_v3 = vsub.f32 %v247_v53, %v250_v61  ;;  %v253_v4 = vadd.f32 %v250_v61, %v247_v53  ;;  %v262_v5 = vadd.f32 %v244_v58, %v238_v51  ;;  %v264_v6 = vsub.f32 %v238_v51, %v244_v58  ;;  %v152_v61 = vld [vmem:[#allocation5 + $0xb8] sm:$0xff] }
  0x1a   :  { %v91_v40 = vadd.f32 %v90_v29, %v83_v28  ;;  %v114_v7 = vmul.f32 %v113_v56, %v113_v56  ;;  %v254_v8 = vmul.f32 %v578_v46, %v574_v39  ;;  %v257_v9 = vmin.f32 %v256_v1, %v252_v62 }
  0x1b   :  { %v259_v10 = vmax.f32 %v258_v2, %v249_v60  ;;  %v255_v11 = vmul.f32 %v240_v48, %v239_v45  ;;  %v263_v12 = vmin.f32 %v262_v5, %v253_v4  ;;  %v265_v13 = vmax.f32 %v264_v6, %v251_v3  ;;  %v160_v5 = vld [vmem:[#allocation5 + $0xc0] sm:$0xff] }
  0x1c   :  { %v99_v63 = vadd.f32 %v98_v41, %v91_v40  ;;  %v273_v14 = vadd.f32 %v245_v59, %v237_v47  ;;  %v275_v17 = vsub.f32 %v237_v47, %v245_v59  ;;  %v279_v18 = vadd.f32 %v246_v0, %v238_v51  ;;  %v134_v40 = vld [vmem:[#allocation2 + $0xa8] sm:$0xff]  ;;  %v136_v41 = vld [vmem:[#allocation5 + $0xa8] sm:$0xff] }
  0x1d   :  { %v260_v16 = vsub.f32 %v257_v9, %v259_v10  ;;  %v266_v21 = vsub.f32 %v263_v12, %v265_v13  ;;  %v281_v23 = vsub.f32 %v238_v51, %v246_v0  ;;  %v269_v28 = vadd.f32 %v255_v11, %v254_v8  ;;  %v341_v9 = vld [vmem:[#allocation5 + $0x40] sm:$0xff] }
  0x1e   :  { %v107_v15 = vadd.f32 %v106_v55, %v99_v63  ;;  %v274_v22 = vmin.f32 %v273_v14, %v252_v62  ;;  %v276_v25 = vmax.f32 %v275_v17, %v249_v60  ;;  %v280_v26 = vmin.f32 %v279_v18, %v253_v4  ;;  %v150_v60 = vld [vmem:[#allocation2 + $0xb8] sm:$0xff]  ;;  %v158_v4 = vld [vmem:[#allocation2 + $0xc0] sm:$0xff]  ;;  %v166_v14 = vld [vmem:[#allocation2 + $0xc8] sm:$0xff] }
  0x1f   :  { %v261_v24 = vmax.f32 %v260_v16, 0.0  ;;  %v267_v27 = vmax.f32 %v266_v21, 0.0  ;;  %v272_v29 = vmul.f32 %v242_v50, %v241_v49  ;;  %v282_v30 = vmax.f32 %v281_v23, %v251_v3  ;;  %v144_v49 = vld [vmem:[#allocation5 + $0xb0] sm:$0xff]  ;;  %v174_v17 = vld [vmem:[#allocation2 + $0xd0] sm:$0xff]  ;;  %v182_v23 = vld [vmem:[#allocation2 + $0xd8] sm:$0xff] }
  0x20   :  { %v115_v31 = vadd.f32 %v114_v7, %v107_v15  ;;  %v122_v32 = vmul.f32 %v121_v57, %v121_v57  ;;  %v129_v37 = vsub.f32 %v126_v19, %v128_v20  ;;  %v277_v38 = vsub.f32 %v274_v22, %v276_v25  ;;  %v324_v7 = vld [vmem:[#allocation5 + $0x38] sm:$0xff]  ;;  %v168_v15 = vld [vmem:[#allocation5 + $0xc8] sm:$0xff]  ;;  %v176_v18 = vld [vmem:[#allocation5 + $0xd0] sm:$0xff] }
  0x21   :  { %v593_v42 = vmul.f32 %v267_v27, %v261_v24  ;;  %v283_v43 = vsub.f32 %v280_v26, %v282_v30  ;;  %v286_v48 = vadd.f32 %v272_v29, %v254_v8  ;;  %v137_v53 = vsub.f32 %v134_v40, %v136_v41  ;;  %v190_v24 = vld [vmem:[#allocation2 + $0xe0] sm:$0xff]  ;;  %v192_v26 = vld [vmem:[#allocation5 + $0xe0] sm:$0xff]  ;;  %v301_v27 = vld [vmem:[#allocation2 + $0x28] sm:$0xff] }
  0x22   :  { %v278_v44 = vmax.f32 %v277_v38, 0.0  ;;  %v123_v51 = vadd.f32 %v122_v32, %v115_v31  ;;  %v130_v52 = vmul.f32 %v129_v37, %v129_v37  ;;  %v145_v59 = vsub.f32 %v142_v54, %v144_v49  ;;  %v305_v30 = vld [vmem:[#allocation5 + $0x28] sm:$0xff]  ;;  %v306_v31 = vld [vmem:[#allocation5] sm:$0xff]  ;;  %v314_v40 = vld [vmem:[#allocation2 + $0x8] sm:$0xff] }
  0x23   :  { %v270_v45 = vsub.f32 %v269_v28, %v593_v42  ;;  %v284_v47 = vmax.f32 %v283_v43, 0.0  ;;  %v138_v58 = vmul.f32 %v137_v53, %v137_v53  ;;  %v153_v3 = vsub.f32 %v150_v60, %v152_v61  ;;  %v302_v28 = vld [vmem:[#allocation2] sm:$0xff]  ;;  %v319_v43 = vld [vmem:[#allocation5 + $0x8] sm:$0xff]  ;;  %v198_v54 = vld [vmem:[#allocation2 + $0xe8] sm:$0xff] }
  0x24   :  { %v131_v57 = vadd.f32 %v130_v52, %v123_v51  ;;  %v146_v2 = vmul.f32 %v145_v59, %v145_v59  ;;  %v161_v12 = vsub.f32 %v158_v4, %v160_v5  ;;  %v169_v21 = vsub.f32 %v166_v14, %v168_v15  ;;  %v317_v41 = vld [vmem:[#allocation5 + $0x30] sm:$0xff]  ;;  %v200_v49 = vld [vmem:[#allocation5 + $0xe8] sm:$0xff]  ;;  %v209_v61 = vld [vmem:[#allocation2 + $0x48] sm:$0xff] }
  0x25   :  { %v271_v50 = vadd.f32 1e-10, %v270_v45  ;;  %v596_v55 = vmul.f32 %v284_v47, %v278_v44  ;;  %v154_v11 = vmul.f32 %v153_v3, %v153_v3  ;;  %v177_v25 = vsub.f32 %v174_v17, %v176_v18 }
  0x26   :  { %v139_v1 = vadd.f32 %v138_v58, %v131_v57  ;;  %v162_v20 = vmul.f32 %v161_v12, %v161_v12  ;;  %v170_v37 = vmul.f32 %v169_v21, %v169_v21  ;;  %v193_v51 = vsub.f32 %v190_v24, %v192_v26 }
  0x27   :  { %v287_v56 = vsub.f32 %v286_v48, %v596_v55  ;;  %v289_v63 = vmul.f32 %v596_v55, %v271_v50  ;;  %v178_v48 = vmul.f32 %v177_v25, %v177_v25 }
  0x28   :  { %v147_v10 = vadd.f32 %v146_v2, %v139_v1 }
  0x29   :  { %v288_v62 = vadd.f32 1e-10, %v287_v56 }
  0x2a   :  { %v155_v19 = vadd.f32 %v154_v11, %v147_v10  ;;  %v201_v10 = vsub.f32 %v198_v54, %v200_v49 }
  0x2b   :  { %v290_v0 = vmul.f32 %v288_v62, %v593_v42 }
  0x2c   :  { %v163_v32 = vadd.f32 %v162_v20, %v155_v19 }
  0x2d   :  { %vm601_vm0 = vcmp.gt.f32.partialorder %v289_v63, %v290_v0  ;;  %v214_v63 = vld [vmem:[#allocation5 + $0x48] sm:$0xff] }
  0x2e   :  { %v292_v8 = vsel %vm601_vm0, %v288_v62, %v271_v50  ;;  %v610_v13 = vsel %vm601_vm0, %v324_v7, %v574_v39  ;;  %v616_v16 = vsel %vm601_vm0, %v341_v9, %v578_v46  ;;  %v184_v39 = vld [vmem:[#allocation5 + $0xd8] sm:$0xff]  ;;  %v311_v46 = vld [vmem:[#allocation2 + $0x30] sm:$0xff]  ;;  %v206_v50 = vld [vmem:[#allocation2 + $0x20] sm:$0xff]  ;;  %v303_v56 = vsel %vm601_vm0, %v301_v27, %v302_v28 }
  0x2f   :  { %456 = vrcp.f32 %v292_v8  ;;  %v185_v47 = vsub.f32 %v182_v23, %v184_v39  ;;  %v307_v57 = vsel %vm601_vm0, %v305_v30, %v306_v31  ;;  %v315_v58 = vsel %vm601_vm0, %v311_v46, %v314_v40  ;;  %v629_v62 = vld [vmem:[#allocation5 + $0x20] sm:$0xff] }
  0x30   :  { %458 = vrsqrt.f32 %v610_v13  ;;  %v320_v59 = vsel %vm601_vm0, %v317_v41, %v319_v43  ;;  %v171_v60 = vadd.f32 %v170_v37, %v163_v32  ;;  %v308_v4 = vsub.f32 %v303_v56, %v307_v57 }
  0x31   :  { %460 = vrsqrt.f32 %v616_v16  ;;  %v186_v3 = vmul.f32 %v185_v47, %v185_v47  ;;  %v321_v5 = vsub.f32 %v315_v58, %v320_v59  ;;  %v194_v9 = vmul.f32 %v193_v51, %v193_v51 }
  0x32   :  { %v212_v11 = vsub.f32 %v206_v50, %v629_v62  ;;  %v215_v12 = vsub.f32 %v209_v61, %v214_v63  ;;  %v179_v14 = vadd.f32 %v178_v48, %v171_v60  ;;  %v297_v19 = vsel %vm601_vm0, %v596_v55, %v593_v42 }
  0x33   :  { %vm333_vm1 = vcmp.eq.f32.partialorder %v610_v13, inf  ;;  %vm335_vm2 = vcmp.eq.f32.partialorder %v610_v13, 0.0  ;;  %v336_v20 = vand.u32 2147483648, %v610_v13  ;;  %v358_v39 = vmul.f32 %v308_v4, %v308_v4 }
  0x34   :  { %v359_v24 = vmul.f32 %v321_v5, %v321_v5  ;;  %v216_v25 = vmul.f32 %v212_v11, %v212_v11  ;;  %vm350_vm3 = vcmp.eq.f32.partialorder %v616_v16, inf  ;;  %v353_v42 = vand.u32 2147483648, %v616_v16 }
  0x35   :  { %v457_v22 = vpop.eup %456  ;;  %vm352_vm4 = vcmp.eq.f32.partialorder %v616_v16, 0.0  ;;  %v217_v28 = vmul.f32 %v215_v12, %v215_v12  ;;  %v339_v30 = vsel %vm601_vm0, %v572_v36, %v568_v34  ;;  %v202_v41 = vmul.f32 %v201_v10, %v201_v10 }
  0x36   :  { %v459_v29 = vpop.eup %458  ;;  %v294_v38 = vmul.f32 %v457_v22, %v292_v8  ;;  %v360_v32 = vadd.f32 %v359_v24, %v358_v39  ;;  %vm220_vm5 = vcmp.eq.f32.partialorder %v629_v62, 0.0  ;;  %vm219_vm6 = vcmp.gt.f32.partialorder %v629_v62, 0.0 }
  0x37   :  { %v327_v44 = vmul.f32 %v459_v29, %v610_v13  ;;  %v461_v45 = vpop.eup %460 }
  0x38   :  { %v344_v53 = vmul.f32 %v461_v45, %v616_v16  ;;  %v295_v0 = vsub.f32 2.0, %v294_v38 }
  0x39   :  { %v328_v52 = vmul.f32 %v459_v29, %v327_v44  ;;  %v218_v44 = vadd.f32 %v217_v28, %v216_v25 }
  0x3a   :  { %v345_v2 = vmul.f32 %v461_v45, %v344_v53  ;;  %v296_v15 = vmul.f32 %v457_v22, %v295_v0  ;;  %v322_v22 = vsel %vm601_vm0, %v570_v35, %v566_v33  ;;  %v356_v33 = vsel %vm601_vm0, %v209_v61, %v206_v50 }
  0x3b   :  { %v329_v1 = vmul.f32 0.5, %v328_v52  ;;  %v187_v35 = vadd.f32 %v186_v3, %v179_v14  ;;  %v370_v6 = vmul.f32 0.5, %v218_v44 }
  0x3c   :  { %v346_v8 = vmul.f32 0.5, %v345_v2  ;;  %v298_v55 = vmul.f32 %v297_v19, %v296_v15 }
  0x3d   :  { %v330_v7 = vsub.f32 1.5, %v329_v1  ;;  %v195_v43 = vadd.f32 %v194_v9, %v187_v35  ;;  %v371_v53 = vsel %vm220_vm5, %v370_v6, 0.0 }
  0x3e   :  { %v347_v18 = vsub.f32 1.5, %v346_v8  ;;  %v357_v38 = vsub.f32 %v356_v33, %v298_v55 }
  0x3f   :  { %v331_v17 = vmul.f32 %v459_v29, %v330_v7  ;;  %v203_v34 = vadd.f32 %v202_v41, %v195_v43 }
  0x40   :  { %v348_v23 = vmul.f32 %v461_v45, %v347_v18  ;;  %v366_v51 = vmul.f32 %v357_v38, %v357_v38 }
  0x41   :  { %v332_v21 = vmul.f32 %v331_v17, %v610_v13 }
  0x42   :  { %v349_v27 = vmul.f32 %v348_v23, %v616_v16 }
  0x43   :  { %v334_v26 = vsel %vm333_vm1, %v610_v13, %v332_v21 }
  0x44   :  { %v337_v29 = vsel %vm335_vm2, %v336_v20, %v334_v26  ;;  %v351_v46 = vsel %vm350_vm3, %v616_v16, %v349_v27 }
  0x45   :  { %v338_v31 = vsub.f32 %v322_v22, %v337_v29  ;;  %v354_v13 = vsel %vm352_vm4, %v353_v42, %v351_v46 }
  0x46   :  { %v355_v37 = vsub.f32 %v339_v30, %v354_v13 }
  0x47   :  { %v361_v40 = vmul.f32 %v338_v31, %v338_v31 }
  0x48   :  { %v363_v47 = vmul.f32 %v355_v37, %v355_v37 }
  0x49   :  { %v362_v45 = vadd.f32 %v361_v40, %v360_v32 }
  0x4b   :  { %v364_v48 = vadd.f32 %v363_v47, %v362_v45 }
  0x4d   :  { %v365_v36 = vmul.f32 5.0, %v364_v48 }
  0x4f   :  { %v367_v52 = vadd.f32 %v366_v51, %v365_v36 }
  0x51   :  { %v368_v16 = vadd.f32 %v367_v52, %v203_v34 }
  0x53   :  { %v369_v54 = vsel %vm219_vm6, %v368_v16, 0.0 }
  0x54   :  { %v372_v49 = vadd.f32 %v371_v53, %v369_v54 }
  0x56   :  { %374 = vst [vmem:[#allocation7] sm:$0xff] %v372_v49 }
  0x57   :  { %385 = dma.vmem_to_hbm [thread:$0]  %s381_s1, 128, %s383_s23, [#allocation4]  }
  0x58   :  { %538 = dma.done.wait [#allocation4], 128  }
  0x59   :  { %539 = vsyncadd [#allocation4], 4294967168 }
  0x5a   :  { %390 = vsyncpa [#allocation3], 1 }
  0x5b   :  { %391 = vsyncpa [#allocation6], 1 }
  0x5c   :  { %392 = vsyncpa [#allocation4], 1 }

</bundles_post_ra>
